<compile_context>
chip_gen: v7x
topology: tpu7x:2x2x1
jax: 0.10.0
libtpu: 0.0.40
codegen_flags: <defaults>
</compile_context>

<pallas_src>
import jax
import jax.numpy as jnp
from jax import lax
from jax.experimental import pallas as pl
from jax.experimental.pallas import tpu as pltpu


# ----------------------------- Pallas kernel -------------------------------
def _d_kernel(x_ref, w_ref, b_ref, o_ref):
    # x_ref: (tm, K)   w_ref: (1, K)   b_ref: (1, 1)   o_ref: (tm, 1)
    prod = x_ref[...] * w_ref[...]                            # VPU; (1,K) splat over sublanes
    y = jnp.sum(prod, axis=-1, keepdims=True) + b_ref[...]    # XLU lane reduce + bias
    o_ref[...] = jax.nn.sigmoid(y)                            # EUP exp + reciprocal


# ------------------------------- wrapper ------------------------------------
def d_init_params(key):
    """Params with the conv weight pre-laid-out as a lane-dense (1, K) row."""
    k_w, k_b = jax.random.split(key)
    # PyTorch Conv2d(1024, 1, 1): weight (Cout=1, Cin=1024, 1, 1), bias (1,)
    w_conv = 0.02 * jax.random.normal(k_w, (1, 1024, 1, 1), jnp.float32)
    b_conv = 0.01 * jax.random.normal(k_b, (1,), jnp.float32)
    # Relayout hoisted to init, not the per-forward path.  Kept as (1, K): an
    # (8, K) pre-replicated copy would only save a ~8-vreg sublane splat per
    # 4 MB tile and would force tm % 8 == 0 shape gymnastics in the kernel.
    return {"w_conv": w_conv, "b_conv": b_conv,
            "w_row": w_conv.reshape(1, 1024), "b": b_conv.reshape(1, 1)}


def d_forward(x, params):
    """x: NCHW (B, 1024, H, W) -> (B*H*W, 1), matching `.view(-1, 1)`."""
    B, C, H, W = x.shape
    M, K = B * H * W, C

    if H == 1 and W == 1:
        x2 = x.reshape(M, K)     # pure reshape of NCHW when H = W = 1: no HBM copy
    else:
        # Row order (b, h, w) must match view(-1, 1) on the NCHW conv output, so
        # a real NCHW->NHWC relayout (one HBM copy) is unavoidable standalone.
        # TODO(synk): for spatial inputs, fuse this head into the producing kernel
        # (channels-on-sublanes / spatial-on-lanes) so this copy disappears.
        x2 = jnp.transpose(x, (0, 2, 3, 1)).reshape(M, K)

    # 4 MB activation tile: ~85%+ of HBM roofline on v5e/v6e/v7x and amortizes
    # per-grid-step overhead.  Small M (the realistic (B, 1024, 1, 1) head
    # input) runs as a single full-extent block -- no padding, no slicing.
    tm = M if M <= 1024 else 1024
    grid = (pl.cdiv(M, tm),)     # ragged last block (if any) is masked by Pallas

    cost = pl.CostEstimate(
        flops=2 * M * K,
        transcendentals=M,
        bytes_accessed=(M * K + K + M + 1) * 4)

    return pl.pallas_call(
        _d_kernel,
        out_shape=jax.ShapeDtypeStruct((M, 1), jnp.float32),
        grid=grid,
        in_specs=[
            pl.BlockSpec((tm, K), lambda i: (i, 0)),   # streamed activation row tile
            pl.BlockSpec((1, K), lambda i: (0, 0)),    # weight row, VMEM-resident
            pl.BlockSpec((1, 1), lambda i: (0, 0)),    # bias
        ],
        out_specs=pl.BlockSpec((tm, 1), lambda i: (i, 0)),
        compiler_params=pltpu.CompilerParams(
            dimension_semantics=("parallel",),          # shards rows across v7x's 2 TCs
            vmem_limit_bytes=32 * 1024 * 1024),         # tm=1024 + temps > v5e 16 MiB default
        cost_estimate=cost,
    )(x2, params["w_row"], params["b"])


# ----------------------- pure-JAX reference (check) --------------------------
def d_reference(x, params):
    y = lax.conv_general_dilated(
        x, params["w_conv"], (1, 1), [(0, 0), (0, 0)],
        dimension_numbers=("NCHW", "OIHW", "NCHW"))
    y = y + params["b_conv"].reshape(1, -1, 1, 1)
    return jax.nn.sigmoid(y).reshape(-1, 1)


# ---------------------------------- main -------------------------------------
if __name__ == "__main__":
    key = jax.random.PRNGKey(0)
    k_x, k_p = jax.random.split(key)

    # D consumes the (B, 1024, 1, 1) feature map produced by the InfoGAN front end.
    x = jax.random.normal(k_x, (2, 1024, 1, 1), jnp.float32)
    params = d_init_params(k_p)

    out = jax.block_until_ready(d_forward(x, params))
    assert out.shape == (2, 1), out.shape

    ref = jax.block_until_ready(d_reference(x, params))
    assert jnp.allclose(out, ref, rtol=1e-5, atol=1e-5), \
        float(jnp.max(jnp.abs(out - ref)))

    print("KERNEL_OK")
</pallas_src>

<mosaic_0001>
module attributes {stable_mosaic.version = 11 : i64} {
  func.func @_d_kernel(%arg0: i32, %arg1: memref<2x1024xf32, #tpu.memory_space<vmem>>, %arg2: memref<1x1024xf32, #tpu.memory_space<vmem>>, %arg3: memref<1x1xf32, #tpu.memory_space<vmem>>, %arg4: memref<2x1xf32, #tpu.memory_space<vmem>>) attributes {dimension_semantics = [#tpu.dimension_semantics<parallel>], iteration_bounds = array<i64: 1>, scalar_prefetch = 0 : i64, scratch_operands = 0 : i64, tpu.core_type = #tpu.core_type<tc>, window_params = [{transform_indices = @transform_0, window_bounds = array<i64: 2, 1024>}, {pipeline_mode = #tpu.pipeline_mode<synchronous>, transform_indices = @transform_1, window_bounds = array<i64: 1, 1024>}, {pipeline_mode = #tpu.pipeline_mode<synchronous>, transform_indices = @transform_2, window_bounds = array<i64: 1, 1>}, {transform_indices = @transform_3, window_bounds = array<i64: 2, 1>}]} {
    %c0 = arith.constant 0 : index
    %c0_0 = arith.constant 0 : index
    %0 = vector.load %arg1[%c0, %c0_0] : memref<2x1024xf32, #tpu.memory_space<vmem>>, vector<2x1024xf32>
    %c0_1 = arith.constant 0 : index
    %c0_2 = arith.constant 0 : index
    %1 = vector.load %arg2[%c0_1, %c0_2] : memref<1x1024xf32, #tpu.memory_space<vmem>>, vector<1x1024xf32>
    %2 = vector.broadcast %1 : vector<1x1024xf32> to vector<2x1024xf32>
    %3 = arith.mulf %0, %2 : vector<2x1024xf32>
    %cst = arith.constant dense<0.000000e+00> : vector<2xf32>
    %4 = vector.multi_reduction <add>, %3, %cst [1] : vector<2x1024xf32> to vector<2xf32>
    %5 = vector.shape_cast %4 : vector<2xf32> to vector<2x1xf32>
    %c0_3 = arith.constant 0 : index
    %c0_4 = arith.constant 0 : index
    %6 = vector.load %arg3[%c0_3, %c0_4] : memref<1x1xf32, #tpu.memory_space<vmem>>, vector<1x1xf32>
    %7 = vector.broadcast %6 : vector<1x1xf32> to vector<2x1xf32>
    %8 = arith.addf %5, %7 : vector<2x1xf32>
    %9 = arith.negf %8 : vector<2x1xf32>
    %10 = math.exp %9 : vector<2x1xf32>
    %cst_5 = arith.constant 1.000000e+00 : f32
    %11 = vector.broadcast %cst_5 : f32 to vector<2x1xf32>
    %12 = arith.addf %11, %10 : vector<2x1xf32>
    %13 = arith.divf %11, %12 : vector<2x1xf32>
    %c0_6 = arith.constant 0 : index
    %c0_7 = arith.constant 0 : index
    %14 = vector.load %arg4[%c0_6, %c0_7] : memref<2x1xf32, #tpu.memory_space<vmem>>, vector<2x1xf32>
    tpu.vector_store %arg4[%c0_6, %c0_7], %13 {strides = array<i32>} : memref<2x1xf32, #tpu.memory_space<vmem>>, vector<2x1xf32>,
    return
  }
  func.func @transform_0(%arg0: i32) -> (i32, i32) {
    %c0_i32 = arith.constant 0 : i32
    %c0_i32_0 = arith.constant 0 : i32
    return %arg0, %c0_i32 : i32, i32
  }
  func.func @transform_1(%arg0: i32) -> (i32, i32) {
    %c0_i32 = arith.constant 0 : i32
    %c0_i32_0 = arith.constant 0 : i32
    %c0_i32_1 = arith.constant 0 : i32
    return %c0_i32, %c0_i32_0 : i32, i32
  }
  func.func @transform_2(%arg0: i32) -> (i32, i32) {
    %c0_i32 = arith.constant 0 : i32
    %c0_i32_0 = arith.constant 0 : i32
    %c0_i32_1 = arith.constant 0 : i32
    return %c0_i32, %c0_i32_0 : i32, i32
  }
  func.func @transform_3(%arg0: i32) -> (i32, i32) {
    %c0_i32 = arith.constant 0 : i32
    %c0_i32_0 = arith.constant 0 : i32
    return %arg0, %c0_i32 : i32, i32
  }
}

</mosaic_0001>

<bundles_post_ra>
// kernel: tpu_custom_call.1
= control target key start
LH: loop header
LB: loop body
LE: loop exit
PB: predicated region body
PF: predicated region fallthrough
CT: control target
= control target key end

     0   :  { %s316_s0 = inlined_call_operand.hbm [shape: f32[2,1024], index: 0, kind: input, shape index: {}]   ;;  %s317_s1 = inlined_call_operand.hbm [shape: f32[1,1024], index: 1, kind: input, shape index: {}]   ;;  %s318_s2 = inlined_call_operand.<no memory space> [shape: f32[1,1], index: 2, kind: input, shape index: {}]   ;;  %s319_s3 = inlined_call_operand.vmem [shape: f32[2,1], index: 3, kind: output, shape index: {}]  }
   0x1   :  { %v8_v0 = vstv %s318_s2 }
   0x2   :  { %9 = vst [vmem:[#allocation2] sm:$0x1] %v8_v0 }
   0x3   :  { %10 = vsyncpa [#allocation4], 0 }
   0x4   :  { %11 = vsyncpa [#allocation6], 0  ;;  %s255_s14 = smov [#allocation3]   ;;  %s256_s16 = smov [#allocation5]  }
   0x5   :  { %s18_s15 = sshll.u32 %s255_s14, 4  ;;  %s28_s17 = sshll.u32 %s256_s16, 4  ;;  %s19_s15 = int_to_ptr.vmem [resolvable:$true] %s18_s15  ;;  %s29_s17 = int_to_ptr.vmem [resolvable:$true] %s28_s17 }
   0x6   :  { %s207_s20 = scalar_lea.hbm %s316_s0, 256 }
   0x7   :  { %p208_p0 = scmp.ne.s32.totalorder %s316_s0, %s207_s20  ;;  %p211_p1 = scmp.lt.u32.totalorder %s207_s20, %s316_s0 }
   0x9   :  { %p213_p2 = pnand %p211_p1, %p208_p0 }
   0xb   :  { %216 = shalt.err (!%p213_p2)
}
   0xc   :  { %s217_s2 = scalar_lea.vmem %s19_s15, 256  ;;  %p222_p4 = scmp.lt.s32.totalorder %s19_s15, %s19_s15 }
   0xd   :  { %p218_p3 = scmp.ne.s32.totalorder %s19_s15, %s217_s2  ;;  %p223_p5 = scmp.lt.s32.totalorder %s217_s2, %s217_s2 }
   0xf   :  { %p224_p6 = por %p223_p5, %p222_p4 }
  0x11   :  { %p225_p7 = pnand %p224_p6, %p218_p3 }
  0x13   :  { %228 = shalt.err (!%p225_p7)
}
  0x14   :  { %21 = dma.hbm_to_vmem [thread:$0]  %s316_s0, 256, %s19_s15, [#allocation4]  }
  0x15   :  { %s229_s29 = scalar_lea.hbm %s317_s1, 128 }
  0x16   :  { %p230_p8 = scmp.ne.s32.totalorder %s317_s1, %s229_s29  ;;  %p233_p9 = scmp.lt.u32.totalorder %s229_s29, %s317_s1 }
  0x18   :  { %p235_p10 = pnand %p233_p9, %p230_p8 }
  0x1a   :  { %238 = shalt.err (!%p235_p10)
}
  0x1b   :  { %s239_s7 = scalar_lea.vmem %s29_s17, 128  ;;  %p244_p12 = scmp.lt.s32.totalorder %s29_s17, %s29_s17 }
  0x1c   :  { %p240_p11 = scmp.ne.s32.totalorder %s29_s17, %s239_s7  ;;  %p245_p13 = scmp.lt.s32.totalorder %s239_s7, %s239_s7 }
  0x1e   :  { %p246_p0 = por %p245_p13, %p244_p12 }
  0x20   :  { %p247_p1 = pnand %p246_p0, %p240_p11 }
  0x22   :  { %250 = shalt.err (!%p247_p1)
}
  0x23   :  { %31 = dma.hbm_to_vmem [thread:$0]  %s317_s1, 128, %s29_s17, [#allocation6]  }
  0x24   :  { %251 = dma.done.wait [#allocation4], 256  }
  0x25   :  { %252 = vsyncadd [#allocation4], 4294967040 }
  0x26   :  { %253 = dma.done.wait [#allocation6], 128  }
  0x27   :  { %254 = vsyncadd [#allocation6], 4294967168  ;;  %v44_v1 = vlaneseq  ;;  %v257_v2 = vmov 1983009808   ;;  %v42_v14 = vld [vmem:[#allocation5] sm:$0xff]  ;;  %v40_v30 = vld [vmem:[#allocation3] sm:$0xff] }
  0x28   :  { %v79_v3 = vunpack.c.l.s4 %v257_v2  ;;  %v41_v33 = vld [vmem:[#allocation3 + $0x8] sm:$0xff]  ;;  %vm158_vm0 = vcmask 1041408   ;;  %v198_v63 = vld [vmem:[#allocation2] ss:$0 sm:$0xff]  ;;  %vm190_vm1 = vcmask 1024  }
  0x29   :  { %v45_v4 = vshrl.u32 %v44_v1, 7 }
  0x2a   :  { %v80_v5 = vunpack.c.0.s8 %v79_v3 }
  0x2b   :  { %v46_v6 = vsub.s32 0, %v45_v4  ;;  %v50_v7 = vsub.s32 1, %v45_v4  ;;  %v54_v8 = vsub.s32 2, %v45_v4  ;;  %v58_v9 = vsub.s32 3, %v45_v4 }
  0x2c   :  { %v62_v10 = vsub.s32 4, %v45_v4  ;;  %v66_v11 = vsub.s32 5, %v45_v4  ;;  %v70_v12 = vsub.s32 6, %v45_v4  ;;  %v74_v13 = vsub.s32 7, %v45_v4 }
  0x2d   :  { %v83_v15 = vsub.s32 %v80_v5, %v45_v4  ;;  %v47_v16 = vrot.slane %v42_v14, %v46_v6  ;;  %v51_v17 = vrot.slane %v42_v14, %v50_v7  ;;  %v55_v18 = vrot.slane %v42_v14, %v54_v8 }
  0x2e   :  { %v59_v19 = vrot.slane %v42_v14, %v58_v9  ;;  %v63_v20 = vrot.slane %v42_v14, %v62_v10  ;;  %v67_v21 = vrot.slane %v42_v14, %v66_v11  ;;  %v71_v22 = vrot.slane %v42_v14, %v70_v12 }
  0x2f   :  { %v75_v23 = vrot.slane %v42_v14, %v74_v13  ;;  %v76_v24 = vcombine.low %v47_v16, %v51_v17 }
  0x30   :  { %v77_v25 = vcombine.low %v55_v18, %v59_v19  ;;  %v93_v26 = vcombine.low %v63_v20, %v67_v21 }
  0x31   :  { %v94_v27 = vcombine.low %v71_v22, %v75_v23  ;;  %v84_v28 = vrot.slane %v76_v24, %v83_v15 }
  0x32   :  { %v91_v29 = vrot.slane %v77_v25, %v83_v15  ;;  %v101_v31 = vrot.slane %v93_v26, %v83_v15 }
  0x33   :  { %v108_v32 = vrot.slane %v94_v27, %v83_v15 }
  0x34   :  { %v92_v34 = vcombine.low %v84_v28, %v91_v29 }
  0x35   :  { %v109_v35 = vcombine.low %v101_v31, %v108_v32 }
  0x36   :  { %v112_v36 = vmul.f32 %v92_v34, %v40_v30 }
  0x37   :  { %v113_v37 = vmul.f32 %v109_v35, %v41_v33 }
  0x38   :  { %v116_v38 = vcombine.high %v112_v36, %v112_v36  ;;  %v123_v39 = vrot.slane %v112_v36, %v83_v15 }
  0x39   :  { %v133_v40 = vcombine.high %v113_v37, %v113_v37  ;;  %v140_v43 = vrot.slane %v113_v37, %v83_v15 }
  0x3a   :  { %v130_v41 = vrot.slane %v116_v38, %v83_v15  ;;  %v131_v42 = vcombine.high %v123_v39, %v123_v39  ;;  %v159_v44 = vsel %vm158_vm0, %v123_v39, 0.0 }
  0x3b   :  { %v147_v49 = vrot.slane %v133_v40, %v83_v15  ;;  %v148_v50 = vcombine.high %v140_v43, %v140_v43  ;;  %v166_v53 = vsel %vm158_vm0, %v140_v43, 0.0 }
  0x3c   :  { %v132_v45 = vcombine.high %v130_v41, %v130_v41  ;;  %v160_v46 = vsel %vm158_vm0, %v131_v42, 0.0  ;;  %v162_v47 = vsel %vm158_vm0, %v130_v41, 0.0 }
  0x3d   :  { %v161_v48 = vadd.f32 %v160_v46, %v159_v44  ;;  %v149_v55 = vcombine.high %v147_v49, %v147_v49  ;;  %v168_v56 = vsel %vm158_vm0, %v148_v50, 0.0  ;;  %v170_v58 = vsel %vm158_vm0, %v147_v49, 0.0 }
  0x3e   :  { %v164_v51 = vsel %vm158_vm0, %v132_v45, 0.0 }
  0x3f   :  { %v163_v52 = vadd.f32 %v162_v47, %v161_v48  ;;  %v172_v60 = vsel %vm158_vm0, %v149_v55, 0.0 }
  0x41   :  { %v165_v54 = vadd.f32 %v164_v51, %v163_v52 }
  0x43   :  { %v167_v57 = vadd.f32 %v166_v53, %v165_v54 }
  0x45   :  { %v169_v59 = vadd.f32 %v168_v56, %v167_v57 }
  0x47   :  { %v171_v61 = vadd.f32 %v170_v58, %v169_v59 }
  0x49   :  { %v173_v62 = vadd.f32 %v172_v60, %v171_v61 }
  0x4b   :  { %174 = vadd.xlane.f32.xlu0 %v173_v62 }
  0xd8   :  { %v175_v0 = vpop.xlane.xlu0 %174 }
  0xd9   :  { %v183_v1 = vadd.f32 %v198_v63, %v175_v0 }
  0xdb   :  { %v199_v2 = vmul.f32 -1.442695, %v183_v1 }
  0xdd   :  { %203 = vpow2.f32 %v199_v2 }
  0xe7   :  { %v204_v3 = vpop.eup %203 }
  0xe8   :  { %v187_v4 = vadd.f32 1.0, %v204_v3 }
  0xea   :  { %205 = vrcp.f32 %v187_v4 }
  0xf4   :  { %v206_v5 = vpop.eup %205 }
  0xf5   :  { %191 = vst.msk [vmem:[%s319_s3] sm:$0x3] %vm190_vm1, %v206_v5 }
  0xf6   :  { %196 = vsyncpa [#allocation4], 1 }
  0xf7   :  { %197 = vsyncpa [#allocation6], 1 }

</bundles_post_ra>
